<compile_context>
chip_gen: v6e
topology: v6e:2x2x1
jax: 0.10.0
libtpu: 0.0.40
codegen_flags: <defaults>
</compile_context>

<pallas_src>
import jax
import jax.numpy as jnp
from jax import lax
from jax.experimental import pallas as pl
from jax.experimental.pallas import tpu as pltpu  # noqa: F401  (TPU backend)


def attn_kernel(hidden_ref, enc_ref, w_ref, out_ref):
    hidden = hidden_ref[...]   # [1, H] f32
    enc = enc_ref[...]         # [S, H] f32
    w = w_ref[...]             # [H, H] f32

    # v = hidden @ W  -> [1, H]   (W in stored layout; no transpose)
    v = jnp.dot(hidden, w, preferred_element_type=jnp.float32)

    # scores[0, i] = v . enc[i]  -> [1, S]   (contract last dims of both)
    scores = lax.dot_general(
        v, enc,
        dimension_numbers=(((1,), (1,)), ((), ())),
        preferred_element_type=jnp.float32,
    )

    # softmax over the sequence (lane) axis
    m = jnp.max(scores, axis=-1, keepdims=True)
    e = jnp.exp(scores - m)
    denom = jnp.sum(e, axis=-1, keepdims=True)
    out_ref[...] = (e / denom).astype(out_ref.dtype)


def attn_forward(hidden, encoder_outputs, w, b):
    """hidden: [1, H]; encoder_outputs: [S, 1, H]; w: [H, H]; b: [H] -> [1, 1, S]

    `b` is accepted for API parity with the PyTorch module but is not needed:
    the bias contributes a constant shift to every score, which softmax cancels.
    """
    del b  # shift-invariance of softmax over the sequence axis
    S = encoder_outputs.shape[0]
    H = hidden.shape[-1]
    enc = encoder_outputs.reshape(S, H)

    probs = pl.pallas_call(
        attn_kernel,
        out_shape=jax.ShapeDtypeStruct((1, S), jnp.float32),
        # no grid: single invocation, full arrays auto-DMA'd into VMEM
    )(hidden, enc, w)

    return probs.reshape(1, 1, S)


def attn_reference(hidden, encoder_outputs, w, b):
    """Pure-JAX reference mirroring the PyTorch forward (bias included)."""
    S = encoder_outputs.shape[0]
    H = hidden.shape[-1]
    enc = encoder_outputs.reshape(S, H)
    energy = enc @ w.T + b[None, :]                 # [S, H]
    scores = jnp.sum(energy * hidden, axis=-1)      # [S]
    return jax.nn.softmax(scores, axis=0).reshape(1, 1, S)


if __name__ == "__main__":
    H = 32   # hidden_size
    S = 8    # sequence length

    key = jax.random.PRNGKey(0)
    k_h, k_e, k_w, k_b = jax.random.split(key, 4)

    hidden = jax.random.normal(k_h, (1, H), dtype=jnp.float32)
    encoder_outputs = jax.random.normal(k_e, (S, 1, H), dtype=jnp.float32)

    # Deterministic nn.Linear(H, H)-style init (uniform in [-1/sqrt(H), 1/sqrt(H)])
    bound = 1.0 / (H ** 0.5)
    w = jax.random.uniform(k_w, (H, H), minval=-bound, maxval=bound, dtype=jnp.float32)
    b = jax.random.uniform(k_b, (H,), minval=-bound, maxval=bound, dtype=jnp.float32)

    out = attn_forward(hidden, encoder_outputs, w, b)
    out = jax.block_until_ready(out)

    ref = attn_reference(hidden, encoder_outputs, w, b)
    assert out.shape == (1, 1, S), out.shape
    assert jnp.allclose(out, ref, atol=1e-5, rtol=1e-5), (out, ref)

    print("KERNEL_OK")
</pallas_src>

<mosaic_0001>
module attributes {stable_mosaic.version = 11 : i64} {
  func.func @attn_kernel(%arg0: memref<1x32xf32, #tpu.memory_space<vmem>>, %arg1: memref<8x32xf32, #tpu.memory_space<vmem>>, %arg2: memref<32x32xf32, #tpu.memory_space<vmem>>, %arg3: memref<1x8xf32, #tpu.memory_space<vmem>>) attributes {dimension_semantics = [], scalar_prefetch = 0 : i64, scratch_operands = 0 : i64, tpu.core_type = #tpu.core_type<tc>} {
    %c0 = arith.constant 0 : index
    %c0_0 = arith.constant 0 : index
    %0 = vector.load %arg0[%c0, %c0_0] : memref<1x32xf32, #tpu.memory_space<vmem>>, vector<1x32xf32>
    %c0_1 = arith.constant 0 : index
    %c0_2 = arith.constant 0 : index
    %1 = vector.load %arg1[%c0_1, %c0_2] : memref<8x32xf32, #tpu.memory_space<vmem>>, vector<8x32xf32>
    %c0_3 = arith.constant 0 : index
    %c0_4 = arith.constant 0 : index
    %2 = vector.load %arg2[%c0_3, %c0_4] : memref<32x32xf32, #tpu.memory_space<vmem>>, vector<32x32xf32>
    %cst = arith.constant dense<0.000000e+00> : vector<1x32xf32>
    %3 = tpu.matmul %0, %2, %cst {dimension_numbers = #tpu.dot_dimension_numbers<[1], [0], [0], [1], [0, 0, 1, 1], [], []>} : vector<1x32xf32>, vector<32x32xf32>, vector<1x32xf32> -> vector<1x32xf32>
    %cst_5 = arith.constant dense<0.000000e+00> : vector<1x8xf32>
    %4 = tpu.matmul %3, %1, %cst_5 {dimension_numbers = #tpu.dot_dimension_numbers<[1], [1], [0], [0], [0, 0, 1, 0], [], []>} : vector<1x32xf32>, vector<8x32xf32>, vector<1x8xf32> -> vector<1x8xf32>
    %cst_6 = arith.constant dense<0xFF800000> : vector<1xf32>
    %5 = vector.multi_reduction <maximumf>, %4, %cst_6 [1] : vector<1x8xf32> to vector<1xf32>
    %6 = vector.shape_cast %5 : vector<1xf32> to vector<1x1xf32>
    %7 = vector.broadcast %6 : vector<1x1xf32> to vector<1x8xf32>
    %8 = arith.subf %4, %7 : vector<1x8xf32>
    %9 = math.exp %8 : vector<1x8xf32>
    %cst_7 = arith.constant dense<0.000000e+00> : vector<1xf32>
    %10 = vector.multi_reduction <add>, %9, %cst_7 [1] : vector<1x8xf32> to vector<1xf32>
    %11 = vector.shape_cast %10 : vector<1xf32> to vector<1x1xf32>
    %12 = vector.broadcast %11 : vector<1x1xf32> to vector<1x8xf32>
    %13 = arith.divf %9, %12 : vector<1x8xf32>
    %c0_8 = arith.constant 0 : index
    %c0_9 = arith.constant 0 : index
    %14 = vector.load %arg3[%c0_8, %c0_9] : memref<1x8xf32, #tpu.memory_space<vmem>>, vector<1x8xf32>
    tpu.vector_store %arg3[%c0_8, %c0_9], %13 {strides = array<i32>} : memref<1x8xf32, #tpu.memory_space<vmem>>, vector<1x8xf32>,
    return
  }
}

</mosaic_0001>

<bundles_post_ra>
// kernel: tpu_custom_call.1
= control target key start
LH: loop header
LB: loop body
LE: loop exit
PB: predicated region body
PF: predicated region fallthrough
CT: control target
= control target key end

     0   :  { %8 = vsyncpa [#allocation3], 0  ;;  %s404_s0 = inlined_call_operand.hbm [shape: f32[1,32], index: 0, kind: input, shape index: {}]   ;;  %s405_s1 = inlined_call_operand.hbm [shape: f32[8,32], index: 1, kind: input, shape index: {}]   ;;  %s406_s2 = inlined_call_operand.hbm [shape: f32[32,32], index: 2, kind: input, shape index: {}]   ;;  %s407_s3 = inlined_call_operand.hbm [shape: f32[1,8], index: 3, kind: output, shape index: {}]  }
   0x1   :  { %9 = vsyncpa [#allocation6], 0 }
   0x2   :  { %10 = vsyncpa [#allocation4], 0  ;;  %s361_s12 = smov [#allocation5]   ;;  %s362_s14 = smov [#allocation2]  }
   0x3   :  { %s27_s13 = sshll.u32 %s361_s12, 4  ;;  %s17_s15 = sshll.u32 %s362_s14, 4  ;;  %s28_s13 = int_to_ptr.vmem [resolvable:$true] %s27_s13  ;;  %s18_s15 = int_to_ptr.vmem [resolvable:$true] %s17_s15 }
   0x4   :  { %s283_s16 = scalar_lea.vmem %s28_s13, 128  ;;  %p288_p1 = scmp.lt.s32.totalorder %s28_s13, %s28_s13 }
   0x5   :  { %p284_p0 = scmp.ne.s32.totalorder %s28_s13, %s283_s16  ;;  %p289_p2 = scmp.lt.s32.totalorder %s283_s16, %s283_s16 }
   0x7   :  { %p290_p3 = por %p289_p2, %p288_p1 }
   0x9   :  { %p291_p4 = pnand %p290_p3, %p284_p0 }
   0xb   :  { %294 = shalt.err (!%p291_p4)
}
   0xc   :  { %30 = dma.hbm_to_vmem [thread:$0]  %s405_s1, 128, %s28_s13, [#allocation6]  }
   0xd   :  { %s303_s19 = scalar_lea.vmem %s18_s15, 16  ;;  %s307_s20 = scalar_lea.vmem %s18_s15, 32 }
   0xe   :  { %p304_p5 = scmp.ne.s32.totalorder %s18_s15, %s303_s19  ;;  %p308_p6 = scmp.lt.s32.totalorder %s18_s15, %s18_s15 }
   0xf   :  { %p309_p7 = scmp.lt.s32.totalorder %s307_s20, %s303_s19 }
  0x11   :  { %p310_p8 = por %p309_p7, %p308_p6 }
  0x13   :  { %p311_p9 = pnand %p310_p8, %p304_p5 }
  0x15   :  { %314 = shalt.err (!%p311_p9)
}
  0x16   :  { %20 = dma.hbm_to_vmem [thread:$0]  %s404_s0, 16, %s18_s15, [#allocation3]  }
  0x17   :  { %s363_s23 = smov [#allocation7]  }
  0x18   :  { %s36_s24 = sshll.u32 %s363_s23, 4  ;;  %s37_s24 = int_to_ptr.vmem [resolvable:$true] %s36_s24 }
  0x19   :  { %s323_s25 = scalar_lea.vmem %s37_s24, 512  ;;  %p328_p11 = scmp.lt.s32.totalorder %s37_s24, %s37_s24 }
  0x1a   :  { %p324_p10 = scmp.ne.s32.totalorder %s37_s24, %s323_s25  ;;  %p329_p12 = scmp.lt.s32.totalorder %s323_s25, %s323_s25 }
  0x1c   :  { %p330_p13 = por %p329_p12, %p328_p11 }
  0x1e   :  { %p331_p0 = pnand %p330_p13, %p324_p10 }
  0x20   :  { %334 = shalt.err (!%p331_p0)
}
  0x21   :  { %s364_s1 = smov 128   ;;  %s365_s26 = smov 8  }
  0x22   :  { %42 = dma.hbm_to_vmem [thread:$0]  %s406_s2, 512, %s37_s24, [#allocation6], %s364_s1, %s364_s1, %s365_s26  }
  0x23   :  { %355 = dma.done.wait [#allocation3], 16  }
  0x24   :  { %356 = vsyncadd [#allocation3], 4294967280 }
  0x25   :  { %357 = dma.done.wait [#allocation6], 640  }
  0x26   :  { %358 = vsyncadd [#allocation6], 4294966656  ;;  %v366_v0 = vmov 0.0   ;;  %vm367_vm0 = vmmov 0   ;;  %v57_v1 = vld [vmem:[#allocation7 + $0x18] sm:$0xff]  ;;  %v56_v2 = vld [vmem:[#allocation7 + $0x10] sm:$0xff] }
  0x27   :  { %247 = vmatprep.subr.mxu0 %v366_v0  ;;  %255 = vmatprep.mubr.msk.f32.mxu0 %vm367_vm0, %v366_v0  ;;  %vm58_vm1 = vcmask 261120   ;;  %v53_v3 = vld [vmem:[#allocation5] sm:$0xff]  ;;  %v55_v4 = vld [vmem:[#allocation7 + $0x8] sm:$0xff]  ;;  %v54_v5 = vld [vmem:[#allocation7] sm:$0xff]  ;;  %vm208_vm2 = vcmask 57344   ;;  %s368_s0 = smov [#allocation8]  }
  0x28   :  { %258 = vmatprep.subr.mxu1 %v366_v0  ;;  %260 = vmatprep.mubr.msk.f32.mxu1 %vm367_vm0, %v366_v0  ;;  %v52_v6 = vld [vmem:[#allocation2] sm:$0x1]  ;;  %s227_s2 = sshll.u32 %s368_s0, 4  ;;  %s228_s2 = int_to_ptr.vmem [resolvable:$true] %s227_s2 }
  0x29   :  { %248 = vmatpush3.msra.mxu0 %v57_v1  ;;  %259 = vmatpush3.xpose.msk.msra.mxu1 %vm58_vm1, %v53_v3  ;;  %s335_s29 = scalar_lea.vmem %s228_s2, 16  ;;  %s339_s30 = scalar_lea.vmem %s228_s2, 32 }
  0x2a   :  { %249 = vmatprep.subr.mxu0 %v366_v0  ;;  %p336_p1 = scmp.ne.s32.totalorder %s228_s2, %s335_s29  ;;  %p340_p2 = scmp.lt.s32.totalorder %s228_s2, %s228_s2 }
  0x2b   :  { %250 = vmatpush3.msra.mxu0 %v56_v2  ;;  %p341_p3 = scmp.lt.s32.totalorder %s339_s30, %s335_s29 }
  0x2c   :  { %251 = vmatprep.subr.mxu0 %v366_v0 }
  0x2d   :  { %252 = vmatpush3.msra.mxu0 %v55_v4  ;;  %p342_p4 = por %p341_p3, %p340_p2 }
  0x2e   :  { %253 = vmatprep.subr.mxu0 %v366_v0 }
  0x2f   :  { %254 = vmatpush3.msra.mxu0 %v54_v5  ;;  %p343_p5 = pnand %p342_p4, %p336_p1 }
  0x30   :  { %256 = vmatmul.mubr.msk.f32.vlgmr.msra.gmra.mxu0 %vm58_vm1, %v52_v6 }
  0xf0   :  { %v128_v7 = vpop.f32.mrf.mxu0 }
  0xf1   :  { %261 = vmatmul.mubr.msk.f32.vlgmr.msra.gmra.mxu1 %vm58_vm1, %v128_v7 }
  0xf2   :  { %v257_v8 = vpop.f32.mrf.mxu0 }
 0x1b1   :  { %v204_v9 = vpop.f32.mrf.mxu1 }
 0x1b2   :  { %v209_v10 = vsel %vm208_vm2, %v204_v9, -inf }
 0x1b3   :  { %210 = vmax.xlane.f32.xlu0 %v209_v10  ;;  %v262_v11 = vpop.f32.mrf.mxu1 }
 0x23c   :  { %v211_v12 = vpop.xlane.xlu0 %210 }
 0x23d   :  { %v212_v13 = vsub.f32 %v204_v9, %v211_v12 }
 0x23f   :  { %v213_v14 = vmul.f32 1.442695, %v212_v13 }
 0x241   :  { %271 = vpow2.f32 %v213_v14 }
 0x24e   :  { %v272_v15 = vpop.eup %271 }
 0x24f   :  { %v215_v16 = vsel %vm208_vm2, %v272_v15, 0.0 }
 0x250   :  { %216 = vadd.xlane.f32.xlu0 %v215_v16 }
 0x2d9   :  { %v217_v17 = vpop.xlane.xlu0 %216 }
 0x2da   :  { %273 = vrcp.f32 %v217_v17 }
 0x2e7   :  { %v274_v18 = vpop.eup %273 }
 0x2e8   :  { %v219_v19 = vmul.f32 %v274_v18, %v272_v15 }
 0x2ea   :  { %220 = vst.msk [vmem:[#allocation8] sm:$0x1] %vm208_vm2, %v219_v19 }
 0x2eb   :  { %346 = shalt.err (!%p343_p5)
}
 0x2ec   :  { %230 = dma.vmem_to_hbm [thread:$0]  %s228_s2, 16, %s407_s3, [#allocation4]  }
 0x2ed   :  { %359 = dma.done.wait [#allocation4], 16  }
 0x2ee   :  { %360 = vsyncadd [#allocation4], 4294967280 }
 0x2ef   :  { %234 = vsyncpa [#allocation3], 1 }
 0x2f0   :  { %235 = vsyncpa [#allocation6], 1 }
 0x2f1   :  { %236 = vsyncpa [#allocation4], 1 }

</bundles_post_ra>
